<compile_context>
chip_gen: v7x
topology: tpu7x:2x2x1
jax: 0.10.0
libtpu: 0.0.40
codegen_flags: <defaults>
</compile_context>

<pallas_src>
import math

import jax
import jax.numpy as jnp
from jax.experimental import pallas as pl
from jax.experimental.pallas import tpu as pltpu


def _round_up(x, m):
    return ((x + m - 1) // m) * m


def _ocr_ptr_kernel(q_ref, k_ref, mask_ref,
                    wq_ref, bq_ref, wk_ref, bk_ref,
                    out_ref):
    Bb, Tq, H = q_ref.shape
    _, Tk, _ = k_ref.shape
    Dk = wq_ref.shape[1]

    # Fold (Bb, T) into the GEMM row axis: one big projection matmul each.
    # (Tq/Tk are padded to multiples of 8 in the wrapper so the reshape is
    #  layout-free.)
    q_flat = q_ref[...].reshape(Bb * Tq, H)
    k_flat = k_ref[...].reshape(Bb * Tk, H)

    # Q projection (scale already folded into wq/bq by the wrapper) and K projection.
    q = jnp.dot(q_flat, wq_ref[...], preferred_element_type=jnp.float32) + bq_ref[...]
    k = jnp.dot(k_flat, wk_ref[...], preferred_element_type=jnp.float32) + bk_ref[...]

    q3 = q.reshape(Bb, Tq, Dk)
    k3 = k.reshape(Bb, Tk, Dk)

    # Batched contraction over Dk, batch dim 0 -> (Bb, Tq, Tk).  No explicit
    # transpose of k is materialized.
    scores = jax.lax.dot_general(
        q3, k3,
        dimension_numbers=(((2,), (2,)), ((0,), (0,))),
        preferred_element_type=jnp.float32)

    # extended_attention_mask = (1 - mask) * -10000, computed once per (Bb, Tk)
    # tile and broadcast over Tq.
    ext = (1.0 - mask_ref[...].astype(jnp.float32)) * -10000.0   # (Bb, Tk)
    out_ref[...] = (scores + ext[:, None, :]).astype(out_ref.dtype)


def ocr_ptr_net(query_inputs, key_inputs, attention_mask,
                wq, bq, wk, bk, query_key_size, *, block_b=8):
    """JAX wrapper reproducing OcrPtrNet.forward semantics."""
    assert attention_mask.ndim == 2

    squeeze_result = False
    if query_inputs.ndim == 2:
        # PyTorch: query_layer.unsqueeze(1), squeeze scores afterwards.
        query_inputs = query_inputs[:, None, :]
        squeeze_result = True

    B, Tq, H = query_inputs.shape
    _, Tk, _ = key_inputs.shape
    Dk = wq.shape[1]

    # Fold 1/sqrt(query_key_size) into the query projection parameters.
    scale = 1.0 / math.sqrt(query_key_size)
    wq_s = (wq.astype(jnp.float32) * scale).astype(wq.dtype)
    bq_s = (bq.astype(jnp.float32) * scale).astype(bq.dtype)

    # Pad Tq to a multiple of 8 (sublane) and Tk to a multiple of 128 so the
    # output block is lane-dense; padding is sliced off afterwards.
    Tq_p = max(8, _round_up(Tq, 8))
    Tk_p = max(128, _round_up(Tk, 128))

    # Batch blocking: Bb batches per grid step.  If Bb < B it must be a
    # multiple of 8 (sublane dim of the 2-D mask block).
    if B <= block_b:
        Bb, B_p = B, B
    else:
        Bb = block_b if block_b % 8 == 0 else 8
        B_p = _round_up(B, Bb)

    qp = jnp.pad(query_inputs, ((0, B_p - B), (0, Tq_p - Tq), (0, 0)))
    kp = jnp.pad(key_inputs, ((0, B_p - B), (0, Tk_p - Tk), (0, 0)))
    mp = jnp.pad(attention_mask, ((0, B_p - B), (0, Tk_p - Tk)))

    out = pl.pallas_call(
        _ocr_ptr_kernel,
        out_shape=jax.ShapeDtypeStruct((B_p, Tq_p, Tk_p), jnp.float32),
        grid_spec=pltpu.PrefetchScalarGridSpec(
            num_scalar_prefetch=0,
            grid=(B_p // Bb,),
            in_specs=[
                pl.BlockSpec((Bb, Tq_p, H), lambda b: (b, 0, 0)),   # query block
                pl.BlockSpec((Bb, Tk_p, H), lambda b: (b, 0, 0)),   # key block
                pl.BlockSpec((Bb, Tk_p), lambda b: (b, 0)),         # mask block
                # Weights/biases: whole-array, VMEM-resident (no per-step DMA,
                # no double-buffer duplication).
                pl.BlockSpec(memory_space=pltpu.MemorySpace.VMEM),  # Wq^T * scale
                pl.BlockSpec(memory_space=pltpu.MemorySpace.VMEM),  # bq * scale
                pl.BlockSpec(memory_space=pltpu.MemorySpace.VMEM),  # Wk^T
                pl.BlockSpec(memory_space=pltpu.MemorySpace.VMEM),  # bk
            ],
            out_specs=pl.BlockSpec((Bb, Tq_p, Tk_p), lambda b: (b, 0, 0)),
        ),
        compiler_params=pltpu.CompilerParams(
            # Batch-block axis is independent -> shard across TCs on v7x
            # (needs >= 2 blocks to actually use both cores).
            dimension_semantics=("parallel",)),
    )(qp, kp, mp, wq_s, bq_s, wk, bk)

    out = out[:B, :Tq, :Tk]
    if squeeze_result:
        out = out[:, 0, :]
    return out


def _reference(query_inputs, key_inputs, attention_mask, wq, bq, wk, bk, dk):
    ext = ((1.0 - attention_mask) * -10000.0)[:, None, :]
    q = query_inputs
    squeeze = False
    if q.ndim == 2:
        q = q[:, None, :]
        squeeze = True
    ql = q @ wq + bq
    kl = key_inputs @ wk + bk
    s = jnp.einsum("bqd,bkd->bqk", ql, kl) / math.sqrt(dk) + ext
    return s[:, 0, :] if squeeze else s


if __name__ == "__main__":
    key = jax.random.PRNGKey(0)
    B, Tq, Tk, H = 2, 8, 8, 32
    Dk = H  # query_key_size defaults to hidden_size

    k1, k2, k3, k4, k5, k6, k7 = jax.random.split(key, 7)
    query_inputs = jax.random.normal(k1, (B, Tq, H), dtype=jnp.float32)
    key_inputs = jax.random.normal(k2, (B, Tk, H), dtype=jnp.float32)
    attention_mask = (jax.random.uniform(k3, (B, Tk)) > 0.3).astype(jnp.float32)

    # Deterministic parameter init (nn.Linear shapes: W [Dk, H], b [Dk]); stored transposed.
    bound = 1.0 / math.sqrt(H)
    wq = jax.random.uniform(k4, (H, Dk), minval=-bound, maxval=bound, dtype=jnp.float32)
    bq = jax.random.uniform(k5, (1, Dk), minval=-bound, maxval=bound, dtype=jnp.float32)
    wk = jax.random.uniform(k6, (H, Dk), minval=-bound, maxval=bound, dtype=jnp.float32)
    bk = jax.random.uniform(k7, (1, Dk), minval=-bound, maxval=bound, dtype=jnp.float32)

    # 3-D query path
    scores = ocr_ptr_net(query_inputs, key_inputs, attention_mask, wq, bq, wk, bk, Dk)
    jax.block_until_ready(scores)
    ref = _reference(query_inputs, key_inputs, attention_mask, wq, bq, wk, bk, Dk)
    assert scores.shape == (B, Tq, Tk)
    assert jnp.allclose(scores, ref, atol=1e-4, rtol=1e-4)

    # 2-D query path (decoding-step style, squeeze_result=True)
    q2d = query_inputs[:, 0, :]
    scores2d = ocr_ptr_net(q2d, key_inputs, attention_mask, wq, bq, wk, bk, Dk)
    jax.block_until_ready(scores2d)
    ref2d = _reference(q2d, key_inputs, attention_mask, wq, bq, wk, bk, Dk)
    assert scores2d.shape == (B, Tk)
    assert jnp.allclose(scores2d, ref2d, atol=1e-4, rtol=1e-4)

    print("KERNEL_OK")
</pallas_src>

<mosaic_0001>
module attributes {stable_mosaic.version = 11 : i64} {
  func.func @_ocr_ptr_kernel(%arg0: i32, %arg1: memref<2x8x32xf32, #tpu.memory_space<vmem>>, %arg2: memref<2x128x32xf32, #tpu.memory_space<vmem>>, %arg3: memref<2x128xf32, #tpu.memory_space<vmem>>, %arg4: memref<32x32xf32, #tpu.memory_space<vmem>>, %arg5: memref<1x32xf32, #tpu.memory_space<vmem>>, %arg6: memref<32x32xf32, #tpu.memory_space<vmem>>, %arg7: memref<1x32xf32, #tpu.memory_space<vmem>>, %arg8: memref<2x8x128xf32, #tpu.memory_space<vmem>>) attributes {dimension_semantics = [#tpu.dimension_semantics<parallel>], iteration_bounds = array<i64: 1>, scalar_prefetch = 0 : i64, scratch_operands = 0 : i64, tpu.core_type = #tpu.core_type<tc>, window_params = [{transform_indices = @transform_0, window_bounds = array<i64: 2, 8, 32>}, {transform_indices = @transform_1, window_bounds = array<i64: 2, 128, 32>}, {transform_indices = @transform_2, window_bounds = array<i64: 2, 128>}, {pipeline_mode = #tpu.pipeline_mode<synchronous>, transform_indices = @transform_3, window_bounds = array<i64: 32, 32>}, {pipeline_mode = #tpu.pipeline_mode<synchronous>, transform_indices = @transform_4, window_bounds = array<i64: 1, 32>}, {pipeline_mode = #tpu.pipeline_mode<synchronous>, transform_indices = @transform_5, window_bounds = array<i64: 32, 32>}, {pipeline_mode = #tpu.pipeline_mode<synchronous>, transform_indices = @transform_6, window_bounds = array<i64: 1, 32>}, {transform_indices = @transform_7, window_bounds = array<i64: 2, 8, 128>}]} {
    %c0 = arith.constant 0 : index
    %c0_0 = arith.constant 0 : index
    %c0_1 = arith.constant 0 : index
    %0 = vector.load %arg1[%c0, %c0_0, %c0_1] : memref<2x8x32xf32, #tpu.memory_space<vmem>>, vector<2x8x32xf32>
    %1 = vector.shape_cast %0 : vector<2x8x32xf32> to vector<16x32xf32>
    %c0_2 = arith.constant 0 : index
    %c0_3 = arith.constant 0 : index
    %c0_4 = arith.constant 0 : index
    %2 = vector.load %arg2[%c0_2, %c0_3, %c0_4] : memref<2x128x32xf32, #tpu.memory_space<vmem>>, vector<2x128x32xf32>
    %3 = vector.shape_cast %2 : vector<2x128x32xf32> to vector<256x32xf32>
    %c0_5 = arith.constant 0 : index
    %c0_6 = arith.constant 0 : index
    %4 = vector.load %arg4[%c0_5, %c0_6] : memref<32x32xf32, #tpu.memory_space<vmem>>, vector<32x32xf32>
    %cst = arith.constant dense<0.000000e+00> : vector<16x32xf32>
    %5 = tpu.matmul %1, %4, %cst {dimension_numbers = #tpu.dot_dimension_numbers<[1], [0], [0], [1], [0, 0, 1, 1], [], []>} : vector<16x32xf32>, vector<32x32xf32>, vector<16x32xf32> -> vector<16x32xf32>
    %c0_7 = arith.constant 0 : index
    %c0_8 = arith.constant 0 : index
    %6 = vector.load %arg5[%c0_7, %c0_8] : memref<1x32xf32, #tpu.memory_space<vmem>>, vector<1x32xf32>
    %7 = vector.broadcast %6 : vector<1x32xf32> to vector<16x32xf32>
    %8 = arith.addf %5, %7 : vector<16x32xf32>
    %c0_9 = arith.constant 0 : index
    %c0_10 = arith.constant 0 : index
    %9 = vector.load %arg6[%c0_9, %c0_10] : memref<32x32xf32, #tpu.memory_space<vmem>>, vector<32x32xf32>
    %cst_11 = arith.constant dense<0.000000e+00> : vector<256x32xf32>
    %10 = tpu.matmul %3, %9, %cst_11 {dimension_numbers = #tpu.dot_dimension_numbers<[1], [0], [0], [1], [0, 0, 1, 1], [], []>} : vector<256x32xf32>, vector<32x32xf32>, vector<256x32xf32> -> vector<256x32xf32>
    %c0_12 = arith.constant 0 : index
    %c0_13 = arith.constant 0 : index
    %11 = vector.load %arg7[%c0_12, %c0_13] : memref<1x32xf32, #tpu.memory_space<vmem>>, vector<1x32xf32>
    %12 = vector.broadcast %11 : vector<1x32xf32> to vector<256x32xf32>
    %13 = arith.addf %10, %12 : vector<256x32xf32>
    %14 = vector.shape_cast %8 : vector<16x32xf32> to vector<2x8x32xf32>
    %15 = vector.shape_cast %13 : vector<256x32xf32> to vector<2x128x32xf32>
    %cst_14 = arith.constant dense<0.000000e+00> : vector<2x8x128xf32>
    %16 = tpu.matmul %14, %15, %cst_14 {dimension_numbers = #tpu.dot_dimension_numbers<[2], [2], [1], [1], [0, 0, 0, 1, 1, 1], [0], [0]>} : vector<2x8x32xf32>, vector<2x128x32xf32>, vector<2x8x128xf32> -> vector<2x8x128xf32>
    %c0_15 = arith.constant 0 : index
    %c0_16 = arith.constant 0 : index
    %17 = vector.load %arg3[%c0_15, %c0_16] : memref<2x128xf32, #tpu.memory_space<vmem>>, vector<2x128xf32>
    %cst_17 = arith.constant 1.000000e+00 : f32
    %18 = vector.broadcast %cst_17 : f32 to vector<2x128xf32>
    %19 = arith.subf %18, %17 : vector<2x128xf32>
    %cst_18 = arith.constant -1.000000e+04 : f32
    %20 = vector.broadcast %cst_18 : f32 to vector<2x128xf32>
    %21 = arith.mulf %19, %20 : vector<2x128xf32>
    %22 = vector.shape_cast %21 : vector<2x128xf32> to vector<2x1x128xf32>
    %23 = vector.broadcast %22 : vector<2x1x128xf32> to vector<2x8x128xf32>
    %24 = arith.addf %16, %23 : vector<2x8x128xf32>
    %c0_19 = arith.constant 0 : index
    %c0_20 = arith.constant 0 : index
    %c0_21 = arith.constant 0 : index
    %25 = vector.load %arg8[%c0_19, %c0_20, %c0_21] : memref<2x8x128xf32, #tpu.memory_space<vmem>>, vector<2x8x128xf32>
    tpu.vector_store %arg8[%c0_19, %c0_20, %c0_21], %24 {strides = array<i32>} : memref<2x8x128xf32, #tpu.memory_space<vmem>>, vector<2x8x128xf32>,
    return
  }
  func.func @transform_0(%arg0: i32) -> (i32, i32, i32) {
    %c0_i32 = arith.constant 0 : i32
    %c0_i32_0 = arith.constant 0 : i32
    %c0_i32_1 = arith.constant 0 : i32
    return %arg0, %c0_i32, %c0_i32_0 : i32, i32, i32
  }
  func.func @transform_1(%arg0: i32) -> (i32, i32, i32) {
    %c0_i32 = arith.constant 0 : i32
    %c0_i32_0 = arith.constant 0 : i32
    %c0_i32_1 = arith.constant 0 : i32
    return %arg0, %c0_i32, %c0_i32_0 : i32, i32, i32
  }
  func.func @transform_2(%arg0: i32) -> (i32, i32) {
    %c0_i32 = arith.constant 0 : i32
    %c0_i32_0 = arith.constant 0 : i32
    return %arg0, %c0_i32 : i32, i32
  }
  func.func @transform_3(%arg0: i32) -> (i32, i32) {
    %c0_i32 = arith.constant 0 : i32
    %c0_i32_0 = arith.constant 0 : i32
    %c0_i32_1 = arith.constant 0 : i32
    return %c0_i32, %c0_i32_0 : i32, i32
  }
  func.func @transform_4(%arg0: i32) -> (i32, i32) {
    %c0_i32 = arith.constant 0 : i32
    %c0_i32_0 = arith.constant 0 : i32
    %c0_i32_1 = arith.constant 0 : i32
    return %c0_i32, %c0_i32_0 : i32, i32
  }
  func.func @transform_5(%arg0: i32) -> (i32, i32) {
    %c0_i32 = arith.constant 0 : i32
    %c0_i32_0 = arith.constant 0 : i32
    %c0_i32_1 = arith.constant 0 : i32
    return %c0_i32, %c0_i32_0 : i32, i32
  }
  func.func @transform_6(%arg0: i32) -> (i32, i32) {
    %c0_i32 = arith.constant 0 : i32
    %c0_i32_0 = arith.constant 0 : i32
    %c0_i32_1 = arith.constant 0 : i32
    return %c0_i32, %c0_i32_0 : i32, i32
  }
  func.func @transform_7(%arg0: i32) -> (i32, i32, i32) {
    %c0_i32 = arith.constant 0 : i32
    %c0_i32_0 = arith.constant 0 : i32
    %c0_i32_1 = arith.constant 0 : i32
    return %arg0, %c0_i32, %c0_i32_0 : i32, i32, i32
  }
}

</mosaic_0001>

<bundles_post_ra>
// kernel: tpu_custom_call.1
= control target key start
LH: loop header
LB: loop body
LE: loop exit
PB: predicated region body
PF: predicated region fallthrough
CT: control target
= control target key end

     0   :  { %vm72_vm0 = vcmask 261120   ;;  %s1500_s0 = inlined_call_operand.vmem [shape: f32[2,8,32], index: 0, kind: input, shape index: {}]   ;;  %s1501_s1 = inlined_call_operand.vmem [shape: f32[2,128,32], index: 1, kind: input, shape index: {}]   ;;  %s1502_s2 = inlined_call_operand.vmem [shape: f32[2,128], index: 2, kind: input, shape index: {}]   ;;  %s1503_s3 = inlined_call_operand.vmem [shape: f32[32,32], index: 3, kind: input, shape index: {}]   ;;  %s1504_s4 = inlined_call_operand.vmem [shape: f32[1,32], index: 4, kind: input, shape index: {}]   ;;  %s1505_s5 = inlined_call_operand.vmem [shape: f32[32,32], index: 5, kind: input, shape index: {}]   ;;  %s1506_s6 = inlined_call_operand.vmem [shape: f32[1,32], index: 6, kind: input, shape index: {}]   ;;  %s1507_s7 = inlined_call_operand.hbm [shape: f32[2,8,128], index: 7, kind: output, shape index: {}]  }
   0x1   :  { %v154_v0 = vld [vmem:[%s1505_s5] sm:$0xff]  ;;  %v155_v1 = vld [vmem:[%s1505_s5 + $0x8] sm:$0xff]  ;;  %v156_v2 = vld [vmem:[%s1505_s5 + $0x10] sm:$0xff] }
   0x2   :  { %v1073_v3 = vpack.c.bf16 %v155_v1, %v154_v0  ;;  %v157_v4 = vld [vmem:[%s1505_s5 + $0x18] sm:$0xff]  ;;  %v29_v5 = vld [vmem:[%s1501_s1] sm:$0xff]  ;;  %v30_v7 = vld [vmem:[%s1501_s1 + $0x8] sm:$0xff] }
   0x3   :  { %v1077_v6 = vpack.c.bf16 %v157_v4, %v156_v2  ;;  %947 = vmatprep.mubr.msk.f32.mxu1 %vm72_vm0, %v29_v5  ;;  %v31_v8 = vld [vmem:[%s1501_s1 + $0x10] sm:$0xff]  ;;  %v32_v9 = vld [vmem:[%s1501_s1 + $0x18] sm:$0xff]  ;;  %v61_v10 = vld [vmem:[%s1503_s3] sm:$0xff] }
   0x4   :  { %1074 = vmatprep.subr.bf16.mxu1 %v1073_v3  ;;  %v62_v11 = vld [vmem:[%s1503_s3 + $0x8] sm:$0xff]  ;;  %v63_v12 = vld [vmem:[%s1503_s3 + $0x10] sm:$0xff]  ;;  %v33_v13 = vld [vmem:[%s1501_s1 + $0x20] sm:$0xff] }
   0x5   :  { %1076 = vmatpush3.bf16.msra.mxu1 %v1073_v3  ;;  %v1065_v14 = vpack.c.bf16 %v62_v11, %v61_v10  ;;  %v64_v15 = vld [vmem:[%s1503_s3 + $0x18] sm:$0xff]  ;;  %v27_v16 = vld [vmem:[%s1500_s0] sm:$0xff] }
   0x6   :  { %1078 = vmatprep.subr.bf16.mxu1 %v1077_v6  ;;  %v1069_v17 = vpack.c.bf16 %v64_v15, %v63_v12  ;;  %936 = vmatprep.mubr.msk.f32.mxu0 %vm72_vm0, %v27_v16 }
   0x9   :  { %1080 = vmatpush3.bf16.msra.mxu1 %v1077_v6 }
   0xc   :  { %948 = vmatmul.mubr.msk.f32.vlgmr.msra.gmra.mrb[0].mxu1 %vm72_vm0, %v30_v7 }
   0xd   :  { %950 = vmatprep.mubr.msk.f32.mxu1 %vm72_vm0, %v31_v8 }
   0xe   :  { %12 = vsyncpa [#allocation3], 0  ;;  %1066 = vmatprep.subr.bf16.mxu0 %v1065_v14  ;;  %v34_v18 = vld [vmem:[%s1501_s1 + $0x28] sm:$0xff]  ;;  %v35_v19 = vld [vmem:[%s1501_s1 + $0x30] sm:$0xff]  ;;  %v1176_v46 = vmov 0.0|0.0   ;;  %vm1177_vm1 = vmmov 0  }
   0xf   :  { %1068 = vmatpush3.bf16.msra.mxu0 %v1065_v14  ;;  %v36_v20 = vld [vmem:[%s1501_s1 + $0x38] sm:$0xff]  ;;  %v28_v21 = vld [vmem:[%s1500_s0 + $0x8] sm:$0xff]  ;;  %v37_v22 = vld [vmem:[%s1501_s1 + $0x40] sm:$0xff]  ;;  %1113 = vmatprep.subr.bf16.mxu1 %v1176_v46  ;;  %v1178_v47 = vmov 0.0   ;;  %s1180_s11 = smov [#allocation2]  }
  0x10   :  { %951 = vmatmul.mubr.msk.f32.gmra.mrb[2].mxu1 %vm72_vm0, %v32_v9  ;;  %1070 = vmatprep.subr.bf16.mxu0 %v1069_v17  ;;  %v38_v23 = vld [vmem:[%s1501_s1 + $0x48] sm:$0xff]  ;;  %v39_v24 = vld [vmem:[%s1501_s1 + $0x50] sm:$0xff]  ;;  %v40_v25 = vld [vmem:[%s1501_s1 + $0x58] sm:$0xff]  ;;  %s771_s12 = sshll.u32 %s1180_s11, 4  ;;  %s772_s12 = int_to_ptr.vmem [resolvable:$true] %s771_s12 }
  0x11   :  { %953 = vmatprep.mubr.msk.f32.mxu1 %vm72_vm0, %v33_v13  ;;  %v41_v26 = vld [vmem:[%s1501_s1 + $0x60] sm:$0xff]  ;;  %v42_v27 = vld [vmem:[%s1501_s1 + $0x68] sm:$0xff]  ;;  %v43_v28 = vld [vmem:[%s1501_s1 + $0x70] sm:$0xff]  ;;  %p1157_p1 = scmp.lt.s32.totalorder %s772_s12, %s772_s12 }
  0x12   :  { %v44_v29 = vld [vmem:[%s1501_s1 + $0x78] sm:$0xff]  ;;  %v45_v30 = vld [vmem:[%s1501_s1 + $0x80] sm:$0xff]  ;;  %v46_v31 = vld [vmem:[%s1501_s1 + $0x88] sm:$0xff] }
  0x13   :  { %1072 = vmatpush3.bf16.msra.mxu0 %v1069_v17  ;;  %v47_v32 = vld [vmem:[%s1501_s1 + $0x90] sm:$0xff]  ;;  %v48_v33 = vld [vmem:[%s1501_s1 + $0x98] sm:$0xff]  ;;  %v49_v34 = vld [vmem:[%s1501_s1 + $0xa0] sm:$0xff] }
  0x14   :  { %954 = vmatmul.mubr.msk.f32.gmra.mrb[4].mxu1 %vm72_vm0, %v34_v18  ;;  %v50_v35 = vld [vmem:[%s1501_s1 + $0xa8] sm:$0xff]  ;;  %v51_v36 = vld [vmem:[%s1501_s1 + $0xb0] sm:$0xff]  ;;  %v52_v37 = vld [vmem:[%s1501_s1 + $0xb8] sm:$0xff]  ;;  %1081 = vmatprep.subr.bf16.mxu0 %v1176_v46 }
  0x15   :  { %956 = vmatprep.mubr.msk.f32.mxu1 %vm72_vm0, %v35_v19  ;;  %v53_v38 = vld [vmem:[%s1501_s1 + $0xc0] sm:$0xff]  ;;  %v54_v39 = vld [vmem:[%s1501_s1 + $0xc8] sm:$0xff]  ;;  %v55_v40 = vld [vmem:[%s1501_s1 + $0xd0] sm:$0xff] }
  0x16   :  { %937 = vmatmul.mubr.msk.f32.vlgmr.msra.gmra.mrb[0].mxu0 %vm72_vm0, %v28_v21  ;;  %v56_v41 = vld [vmem:[%s1501_s1 + $0xd8] sm:$0xff]  ;;  %v57_v42 = vld [vmem:[%s1501_s1 + $0xe0] sm:$0xff]  ;;  %v58_v43 = vld [vmem:[%s1501_s1 + $0xe8] sm:$0xff] }
  0x17   :  { %v59_v44 = vld [vmem:[%s1501_s1 + $0xf0] sm:$0xff]  ;;  %v60_v45 = vld [vmem:[%s1501_s1 + $0xf8] sm:$0xff]  ;;  %1027 = vmatprep.mubr.msk.f32.mxu0 %vm1177_vm1, %v1178_v47  ;;  %v1388_v48 = vld [vmem:[%s1506_s6] ss:$0 sm:$0xff] }
  0x18   :  { %957 = vmatmul.mubr.msk.f32.gmra.mrb[6].mxu1 %vm72_vm0, %v36_v20  ;;  %vm1394_vm2 = vmpackc.low %vm72_vm0, %vm72_vm0 }
  0x19   :  { %959 = vmatprep.mubr.msk.f32.mxu1 %vm72_vm0, %v37_v22 }
  0x1c   :  { %960 = vmatmul.mubr.msk.f32.gmra.mrb[8].mxu1 %vm72_vm0, %v38_v23 }
  0x1d   :  { %962 = vmatprep.mubr.msk.f32.mxu1 %vm72_vm0, %v39_v24 }
  0x20   :  { %963 = vmatmul.mubr.msk.f32.gmra.mrb[10].mxu1 %vm72_vm0, %v40_v25 }
  0x21   :  { %965 = vmatprep.mubr.msk.f32.mxu1 %vm72_vm0, %v41_v26 }
  0x24   :  { %966 = vmatmul.mubr.msk.f32.gmra.mrb[12].mxu1 %vm72_vm0, %v42_v27 }
  0x25   :  { %968 = vmatprep.mubr.msk.f32.mxu1 %vm72_vm0, %v43_v28 }
  0x28   :  { %969 = vmatmul.mubr.msk.f32.gmra.mrb[14].mxu1 %vm72_vm0, %v44_v29 }
  0x29   :  { %971 = vmatprep.mubr.msk.f32.mxu1 %vm72_vm0, %v45_v30 }
  0x2c   :  { %972 = vmatmul.mubr.msk.f32.gmra.mrb[16].mxu1 %vm72_vm0, %v46_v31 }
  0x2d   :  { %974 = vmatprep.mubr.msk.f32.mxu1 %vm72_vm0, %v47_v32 }
  0x30   :  { %975 = vmatmul.mubr.msk.f32.gmra.mrb[18].mxu1 %vm72_vm0, %v48_v33 }
  0x31   :  { %977 = vmatprep.mubr.msk.f32.mxu1 %vm72_vm0, %v49_v34 }
  0x34   :  { %978 = vmatmul.mubr.msk.f32.gmra.mrb[20].mxu1 %vm72_vm0, %v50_v35 }
  0x35   :  { %980 = vmatprep.mubr.msk.f32.mxu1 %vm72_vm0, %v51_v36 }
  0x38   :  { %981 = vmatmul.mubr.msk.f32.gmra.mrb[22].mxu1 %vm72_vm0, %v52_v37 }
  0x39   :  { %983 = vmatprep.mubr.msk.f32.mxu1 %vm72_vm0, %v53_v38 }
  0x3c   :  { %984 = vmatmul.mubr.msk.f32.gmra.mrb[24].mxu1 %vm72_vm0, %v54_v39 }
  0x3d   :  { %986 = vmatprep.mubr.msk.f32.mxu1 %vm72_vm0, %v55_v40 }
  0x40   :  { %987 = vmatmul.mubr.msk.f32.gmra.mrb[26].mxu1 %vm72_vm0, %v56_v41 }
  0x41   :  { %989 = vmatprep.mubr.msk.f32.mxu1 %vm72_vm0, %v57_v42 }
  0x44   :  { %990 = vmatmul.mubr.msk.f32.gmra.mrb[28].mxu1 %vm72_vm0, %v58_v43 }
  0x45   :  { %992 = vmatprep.mubr.msk.f32.mxu1 %vm72_vm0, %v59_v44 }
  0x48   :  { %993 = vmatmul.mubr.msk.f32.gmra.mrb[30].mxu1 %vm72_vm0, %v60_v45 }
  0x49   :  { %1062 = vmatprep.mubr.msk.f32.mxu1 %vm1177_vm1, %v1178_v47 }
  0xdf   :  { %v949_v49 = vpop.f32.mrb[0].mxu1 }
  0xe0   :  { %v333_v50 = vadd.f32 %v949_v49, %v1388_v48  ;;  %v327_v51 = vpop.f32.mrb[1].mxu1 }
  0xe1   :  { %v328_v52 = vadd.f32 %v1388_v48, %v327_v51 }
  0xe3   :  { %v1082_v54 = vpack.c.bf16 %v333_v50, %v328_v52  ;;  %v952_v55 = vpop.f32.mrb[2].mxu1 }
  0xe4   :  { %v343_v56 = vadd.f32 %v952_v55, %v1388_v48  ;;  %v337_v57 = vpop.f32.mrb[3].mxu1 }
  0xe5   :  { %v338_v58 = vadd.f32 %v1388_v48, %v337_v57  ;;  %1084 = vmatpush3.bf16.xpose.msk.msra.mxu0 %vm1394_vm2, %v1082_v54 }
  0xe6   :  { %1085 = vmatprep.subr.bf16.mxu0 %v1176_v46 }
  0xe7   :  { %v1086_v59 = vpack.c.bf16 %v343_v56, %v338_v58  ;;  %v955_v60 = vpop.f32.mrb[4].mxu1 }
  0xe8   :  { %v353_v61 = vadd.f32 %v955_v60, %v1388_v48  ;;  %v347_v62 = vpop.f32.mrb[5].mxu1 }
  0xe9   :  { %v348_v63 = vadd.f32 %v1388_v48, %v347_v62  ;;  %v1405_v2 = vpop.f32.mrb[0].mxu0 }
  0xea   :  { %v1408_v5 = vpop.f32.mrb[1].mxu0 }
  0xeb   :  { %v1090_v0 = vpack.c.bf16 %v353_v61, %v348_v63  ;;  %v958_v1 = vpop.f32.mrb[6].mxu1 }
  0xec   :  { %v363_v3 = vadd.f32 %v958_v1, %v1388_v48  ;;  %v357_v4 = vpop.f32.mrb[7].mxu1 }
  0xed   :  { %v358_v6 = vadd.f32 %v1388_v48, %v357_v4  ;;  %1088 = vmatpush3.bf16.xpose.msk.msra.mxu0 %vm1394_vm2, %v1086_v59 }
  0xee   :  { %1089 = vmatprep.subr.bf16.mxu0 %v1176_v46 }
  0xef   :  { %v1094_v7 = vpack.c.bf16 %v363_v3, %v358_v6  ;;  %v961_v8 = vpop.f32.mrb[8].mxu1 }
  0xf0   :  { %v373_v9 = vadd.f32 %v961_v8, %v1388_v48  ;;  %v367_v10 = vpop.f32.mrb[9].mxu1  ;;  %v782_v8 = vld [vmem:[%s1504_s4] ss:$0 sm:$0xff] }
  0xf1   :  { %v368_v11 = vadd.f32 %v1388_v48, %v367_v10  ;;  %v146_v10 = vadd.f32 %v782_v8, %v1408_v5  ;;  %v1179_v5 = vmov 1966171168  }
  0xf3   :  { %v1098_v12 = vpack.c.bf16 %v373_v9, %v368_v11  ;;  %v964_v13 = vpop.f32.mrb[10].mxu1  ;;  %v491_v11 = vunpack.c.l.s4 %v1179_v5 }
  0xf4   :  { %v383_v14 = vadd.f32 %v964_v13, %v1388_v48  ;;  %v377_v15 = vpop.f32.mrb[11].mxu1  ;;  %v486_v13 = vld [vmem:[%s1502_s2] sm:$0x3]  ;;  %s1152_s2 = scalar_lea.vmem %s772_s12, 256 }
  0xf5   :  { %v378_v16 = vadd.f32 %v1388_v48, %v377_v15  ;;  %1092 = vmatpush3.bf16.xpose.msk.msra.mxu0 %vm1394_vm2, %v1090_v0  ;;  %v492_v15 = vunpack.c.0.s8 %v491_v11  ;;  %p1153_p0 = scmp.ne.s32.totalorder %s772_s12, %s1152_s2  ;;  %p1158_p2 = scmp.lt.s32.totalorder %s1152_s2, %s1152_s2 }
  0xf6   :  { %1093 = vmatprep.subr.bf16.mxu0 %v1176_v46 }
  0xf7   :  { %v1102_v17 = vpack.c.bf16 %v383_v14, %v378_v16  ;;  %v967_v18 = vpop.f32.mrb[12].mxu1  ;;  %v487_v14 = vsub.f32 1.0, %v486_v13  ;;  %p1159_p3 = por %p1158_p2, %p1157_p1 }
  0xf8   :  { %v393_v19 = vadd.f32 %v967_v18, %v1388_v48  ;;  %v387_v20 = vpop.f32.mrb[13].mxu1 }
  0xf9   :  { %v388_v21 = vadd.f32 %v1388_v48, %v387_v20  ;;  %p1160_p4 = pnand %p1159_p3, %p1153_p0 }
  0xfb   :  { %v1106_v22 = vpack.c.bf16 %v393_v19, %v388_v21  ;;  %v970_v23 = vpop.f32.mrb[14].mxu1 }
  0xfc   :  { %v403_v24 = vadd.f32 %v970_v23, %v1388_v48  ;;  %v397_v25 = vpop.f32.mrb[15].mxu1 }
  0xfd   :  { %v398_v26 = vadd.f32 %v1388_v48, %v397_v25  ;;  %1096 = vmatpush3.bf16.xpose.msk.msra.mxu0 %vm1394_vm2, %v1094_v7 }
  0xfe   :  { %1097 = vmatprep.subr.bf16.mxu0 %v1176_v46 }
  0xff   :  { %v1110_v27 = vpack.c.bf16 %v403_v24, %v398_v26  ;;  %v973_v28 = vpop.f32.mrb[16].mxu1 }
 0x100   :  { %v413_v29 = vadd.f32 %v973_v28, %v1388_v48  ;;  %v407_v30 = vpop.f32.mrb[17].mxu1 }
 0x101   :  { %v408_v31 = vadd.f32 %v1388_v48, %v407_v30 }
 0x103   :  { %v1114_v32 = vpack.c.bf16 %v413_v29, %v408_v31  ;;  %v976_v33 = vpop.f32.mrb[18].mxu1 }
 0x104   :  { %v423_v34 = vadd.f32 %v976_v33, %v1388_v48  ;;  %v417_v35 = vpop.f32.mrb[19].mxu1 }
 0x105   :  { %1100 = vmatpush3.bf16.xpose.msk.msra.mxu0 %vm1394_vm2, %v1098_v12  ;;  %1116 = vmatpush3.bf16.xpose.msk.msra.mxu1 %vm1394_vm2, %v1114_v32  ;;  %v418_v36 = vadd.f32 %v1388_v48, %v417_v35  ;;  %v493_v12 = vlaneseq }
 0x106   :  { %1101 = vmatprep.subr.bf16.mxu0 %v1176_v46  ;;  %1117 = vmatprep.subr.bf16.mxu1 %v1176_v46 }
 0x107   :  { %v1118_v37 = vpack.c.bf16 %v423_v34, %v418_v36  ;;  %v979_v38 = vpop.f32.mrb[20].mxu1  ;;  %v494_v16 = vshrl.u32 %v493_v12, 7 }
 0x108   :  { %v433_v39 = vadd.f32 %v979_v38, %v1388_v48  ;;  %v427_v40 = vpop.f32.mrb[21].mxu1 }
 0x109   :  { %v428_v41 = vadd.f32 %v1388_v48, %v427_v40  ;;  %v495_v18 = vsub.s32 %v492_v15, %v494_v16  ;;  %v514_v53 = vsub.s32 0, %v494_v16 }
 0x10b   :  { %v1122_v42 = vpack.c.bf16 %v433_v39, %v428_v41  ;;  %v982_v43 = vpop.f32.mrb[22].mxu1 }
 0x10c   :  { %v443_v44 = vadd.f32 %v982_v43, %v1388_v48  ;;  %v437_v45 = vpop.f32.mrb[23].mxu1 }
 0x10d   :  { %1104 = vmatpush3.bf16.xpose.msk.msra.mxu0 %vm1394_vm2, %v1102_v17  ;;  %1120 = vmatpush3.bf16.xpose.msk.msra.mxu1 %vm1394_vm2, %v1118_v37  ;;  %v438_v47 = vadd.f32 %v1388_v48, %v437_v45  ;;  %v488_v17 = vmul.f32 -10000.0, %v487_v14 }
 0x10e   :  { %1105 = vmatprep.subr.bf16.mxu0 %v1176_v46  ;;  %1121 = vmatprep.subr.bf16.mxu1 %v1176_v46 }
 0x10f   :  { %v1126_v49 = vpack.c.bf16 %v443_v44, %v438_v47  ;;  %v985_v50 = vpop.f32.mrb[24].mxu1 }
 0x110   :  { %v453_v51 = vadd.f32 %v985_v50, %v1388_v48  ;;  %v447_v52 = vpop.f32.mrb[25].mxu1 }
 0x111   :  { %v448_v54 = vadd.f32 %v1388_v48, %v447_v52 }
 0x113   :  { %v1130_v55 = vpack.c.bf16 %v453_v51, %v448_v54  ;;  %v988_v56 = vpop.f32.mrb[26].mxu1 }
 0x114   :  { %v463_v57 = vadd.f32 %v988_v56, %v1388_v48  ;;  %v457_v58 = vpop.f32.mrb[27].mxu1 }
 0x115   :  { %1108 = vmatpush3.bf16.xpose.msk.msra.mxu0 %vm1394_vm2, %v1106_v22  ;;  %1124 = vmatpush3.bf16.xpose.msk.msra.mxu1 %vm1394_vm2, %v1122_v42  ;;  %v458_v59 = vadd.f32 %v1388_v48, %v457_v58 }
 0x116   :  { %1109 = vmatprep.subr.bf16.mxu0 %v1176_v46  ;;  %1125 = vmatprep.subr.bf16.mxu1 %v1176_v46 }
 0x117   :  { %v1134_v60 = vpack.c.bf16 %v463_v57, %v458_v59  ;;  %v991_v61 = vpop.f32.mrb[28].mxu1 }
 0x118   :  { %v473_v62 = vadd.f32 %v991_v61, %v1388_v48  ;;  %v467_v63 = vpop.f32.mrb[29].mxu1 }
 0x119   :  { %v468_v0 = vadd.f32 %v1388_v48, %v467_v63 }
 0x11b   :  { %v1138_v1 = vpack.c.bf16 %v473_v62, %v468_v0  ;;  %v994_v3 = vpop.f32.mrb[30].mxu1 }
 0x11c   :  { %v483_v4 = vadd.f32 %v994_v3, %v1388_v48  ;;  %v477_v6 = vpop.f32.mrb[31].mxu1 }
 0x11d   :  { %1112 = vmatpush3.bf16.xpose.msk.msra.mxu0 %vm1394_vm2, %v1110_v27  ;;  %1128 = vmatpush3.bf16.xpose.msk.msra.mxu1 %vm1394_vm2, %v1126_v49  ;;  %v478_v7 = vadd.f32 %v1388_v48, %v477_v6  ;;  %v151_v48 = vadd.f32 %v1405_v2, %v782_v8 }
 0x11e   :  { %1129 = vmatprep.subr.bf16.mxu1 %v1176_v46 }
 0x11f   :  { %v1142_v9 = vpack.c.bf16 %v483_v4, %v478_v7 }
 0x124   :  { %1028 = vmatmul.mubr.msk.f32.vlgmr.msra.gmra.mrb[2].mxu0 %vm72_vm0, %v146_v10 }
 0x125   :  { %1132 = vmatpush3.bf16.xpose.msk.msra.mxu1 %vm1394_vm2, %v1130_v55 }
 0x126   :  { %1133 = vmatprep.subr.bf16.mxu1 %v1176_v46 }
 0x12d   :  { %1136 = vmatpush3.bf16.xpose.msk.msra.mxu1 %vm1394_vm2, %v1134_v60 }
 0x12e   :  { %1137 = vmatprep.subr.bf16.mxu1 %v1176_v46 }
 0x135   :  { %1140 = vmatpush3.bf16.xpose.msk.msra.mxu1 %vm1394_vm2, %v1138_v1 }
 0x136   :  { %1141 = vmatprep.subr.bf16.mxu1 %v1176_v46  ;;  %v496_v46 = vrot.slane %v488_v17, %v495_v18 }
 0x138   :  { %v504_v19 = vrot.slane %v496_v46, %v495_v18  ;;  %v497_v23 = vcombine.high %v496_v46, %v496_v46 }
 0x13a   :  { %v515_v20 = vrot.slane %v504_v19, %v514_v53  ;;  %v511_v24 = vrot.slane %v497_v23, %v495_v18 }
 0x13c   :  { %v519_v25 = vrot.slane %v511_v24, %v514_v53 }
 0x13d   :  { %1144 = vmatpush3.bf16.xpose.msk.msra.mxu1 %vm1394_vm2, %v1142_v9 }
 0x144   :  { %1063 = vmatmul.mubr.msk.f32.vlgmr.msra.gmra.mrb[32].mxu1 %vm72_vm0, %v151_v48 }
 0x1f7   :  { %v639_v21 = vpop.f32.mrb[2].mxu0 }
 0x1f8   :  { %v640_v2 = vadd.f32 %v639_v21, %v515_v20  ;;  %v1029_v22 = vpop.f32.mrb[3].mxu0 }
 0x1fa   :  { %764 = vst [vmem:[#allocation2] sm:$0xff] %v640_v2 }
 0x217   :  { %v760_v26 = vpop.f32.mrb[32].mxu1 }
 0x218   :  { %v761_v27 = vadd.f32 %v760_v26, %v519_v25  ;;  %v1064_v28 = vpop.f32.mrb[33].mxu1 }
 0x21a   :  { %765 = vst [vmem:[#allocation2 + $0x8] sm:$0xff] %v761_v27 }
 0x21b   :  { %1163 = shalt.err (!%p1160_p4)
}
 0x21c   :  { %s1164_s5 = scalar_lea.hbm %s1507_s7, 256 }
 0x21d   :  { %p1165_p5 = scmp.ne.s32.totalorder %s1507_s7, %s1164_s5  ;;  %p1168_p6 = scmp.lt.u32.totalorder %s1164_s5, %s1507_s7 }
 0x21f   :  { %p1170_p7 = pnand %p1168_p6, %p1165_p5 }
 0x221   :  { %1173 = shalt.err (!%p1170_p7)
}
 0x222   :  { %s1181_s18 = smov 128   ;;  %s1182_s19 = smov 8  }
 0x223   :  { %777 = dma.vmem_to_hbm [thread:$0]  %s772_s12, 256, %s1507_s7, [#allocation3], %s1181_s18, %s1181_s18, %s1182_s19  }
 0x224   :  { %1174 = dma.done.wait [#allocation3], 256  }
 0x225   :  { %1175 = vsyncadd [#allocation3], 4294967040 }
 0x226   :  { %781 = vsyncpa [#allocation3], 1 }

</bundles_post_ra>
